<compile_context>
chip_gen: v6e
topology: v6e:2x2x1
jax: 0.10.0
libtpu: 0.0.40
codegen_flags: <defaults>
</compile_context>

<pallas_src>
import functools

import jax
import jax.numpy as jnp
from jax.experimental import pallas as pl
from jax.experimental.pallas import tpu as pltpu


def _focal_loss_kernel(*refs, gamma, smooth, num_class, spatial, tile_m,
                       total_rows, size_average, use_alpha):
    if use_alpha:
        logit_ref, tgt_ref, alpha_ref, out_ref, acc_ref = refs
    else:
        logit_ref, tgt_ref, out_ref, acc_ref = refs
        alpha_ref = None

    ni = pl.program_id(0)
    j = pl.program_id(1)

    @pl.when((ni == 0) & (j == 0))
    def _():
        acc_ref[...] = jnp.zeros_like(acc_ref)

    x = logit_ref[0].astype(jnp.float32)        # (C, TM)  class axis on sublanes
    tgt = tgt_ref[0]                            # (1, TM)  int32

    # Softmax probability of the target class (softmax over the class axis,
    # i.e. dim=1 of the original NCHW logits), without materializing the full
    # probability tile:  p_tgt = exp(x_tgt - m) / sum(exp(x - m)).
    m = jnp.max(x, axis=0, keepdims=True)       # (1, TM)
    e = jnp.exp(x - m)                          # (C, TM)
    s = jnp.sum(e, axis=0, keepdims=True)       # (1, TM)

    cls = jax.lax.broadcasted_iota(jnp.int32, (num_class, 1), 0)   # (C, 1)
    is_tgt = cls == tgt                                            # (C, TM)
    e_tgt = jnp.sum(jnp.where(is_tgt, e, 0.0), axis=0, keepdims=True)
    p_tgt = e_tgt / s                                              # (1, TM)

    # Smoothed one-hot dot product, algebraic form:
    #   sum(clamp(one_hot, lo, hi) * p) = lo * sum(p) + (hi - lo) * p_tgt
    lo = (smooth / (num_class - 1)) if num_class > 1 else 0.0  # guard C==1
    hi = 1.0 - smooth
    pt = lo + (hi - lo) * p_tgt + smooth                           # (1, TM)
    logpt = jnp.log(pt)

    # (1 - pt) ** gamma, specialized at trace time for small integer gamma
    # (avoids exp/log EUP transcendentals of jnp.power for the default gamma=2).
    omp = 1.0 - pt
    if float(gamma) == 2.0:
        pw = omp * omp
    elif float(gamma) == 1.0:
        pw = omp
    elif float(gamma) == 0.0:
        pw = jnp.ones_like(omp)
    else:
        pw = jnp.power(omp, gamma)

    if use_alpha:
        a_tgt = jnp.sum(jnp.where(is_tgt, alpha_ref[...], 0.0),
                        axis=0, keepdims=True)                     # (1, TM)
        loss = -1.0 * a_tgt * pw * logpt
    else:
        loss = -1.0 * pw * logpt                                   # (1, TM)

    # Ragged spatial tail: true select (keeps NaN/inf from garbage columns out).
    if spatial % tile_m != 0:
        col = j * tile_m + jax.lax.broadcasted_iota(jnp.int32, (1, tile_m), 1)
        loss = jnp.where(col < spatial, loss, 0.0)

    acc_ref[...] += loss

    @pl.when((ni == pl.num_programs(0) - 1) & (j == pl.num_programs(1) - 1))
    def _():
        total = jnp.sum(acc_ref[...], keepdims=True)               # (1, 1)
        if size_average:
            total = total / jnp.float32(total_rows)
        out_ref[...] = total


def focal_loss(logit, target, *, alpha=None, gamma=2.0, balance_index=0,
               smooth=1e-5, size_average=True, tile_m=2048):
    """Focal loss matching the PyTorch FocalLoss.forward semantics.

    logit:  (N, C, ...) float logits (softmax over axis 1).
    target: (N, 1, ...) or (N, ...) integer class indices.
    Returns a scalar float32 loss.
    """
    if smooth is not None and (smooth < 0 or smooth > 1.0):
        raise ValueError("smooth value should be in [0,1]")

    n, c = int(logit.shape[0]), int(logit.shape[1])
    spatial = 1
    for d in logit.shape[2:]:
        spatial *= int(d)

    # Lane-dense layout: keep NCHW, flatten only the trailing spatial dims
    # (free row-major view -- no transpose, no pad, no extra HBM traffic).
    logit3d = logit.reshape(n, c, spatial)
    tgt3d = target.reshape(n, 1, spatial).astype(jnp.int32)

    # Tile over the spatial/lane axis. Cap the block so the double-buffered
    # logits window stays well inside the scoped-VMEM budget on every chip
    # generation (16/32/32 MiB scoped defaults on v5e/v6e/v7x).
    max_block_bytes = 8 * 1024 * 1024
    itemsize = jnp.dtype(logit.dtype).itemsize
    bytes_per_col = max(c * itemsize, 1)
    cap = max(128, (max_block_bytes // bytes_per_col) // 128 * 128)
    tm_req = min(int(tile_m), cap)
    if tm_req >= spatial:
        tm = spatial                       # full-extent block (always legal)
    else:
        tm = max(128, (tm_req // 128) * 128)
    grid = (n, pl.cdiv(spatial, tm))

    inputs = [logit3d, tgt3d]
    logits_index_map = lambda ni, j: (ni, 0, j)
    # Small blocks are DMA-latency (not bandwidth) dominated -> deepen pipelining.
    logits_block_bytes = c * tm * itemsize
    logits_spec = pl.BlockSpec((1, c, tm), logits_index_map)
    if logits_block_bytes <= (256 << 10) and grid[0] * grid[1] >= 4:
        try:
            logits_spec = pl.BlockSpec((1, c, tm), logits_index_map,
                                       pipeline_mode=pl.Buffered(3))
        except TypeError:  # fall back if this BlockSpec lacks pipeline_mode
            logits_spec = pl.BlockSpec((1, c, tm), logits_index_map)

    in_specs = [
        logits_spec,
        pl.BlockSpec((1, 1, tm), lambda ni, j: (ni, 0, j)),
    ]

    use_alpha = alpha is not None
    if use_alpha:
        if isinstance(alpha, (list, tuple)):
            alpha_vec = jnp.asarray(alpha, jnp.float32)
            alpha_vec = alpha_vec / jnp.sum(alpha_vec)
        elif isinstance(alpha, float):
            alpha_vec = jnp.ones((c,), jnp.float32) * (1.0 - alpha)
            alpha_vec = alpha_vec.at[balance_index].set(alpha)
        else:
            raise TypeError("Not support alpha type")
        inputs.append(alpha_vec.reshape(c, 1))
        in_specs.append(pl.BlockSpec((c, 1), lambda ni, j: (0, 0)))

    kernel = functools.partial(
        _focal_loss_kernel,
        gamma=float(gamma), smooth=float(smooth), num_class=c,
        spatial=spatial, tile_m=tm, total_rows=n * spatial,
        size_average=bool(size_average), use_alpha=use_alpha,
    )

    # TODO(synk): on v7x, shard the grid across the 2 TensorCores (per-core
    # partial sums reduced in the wrapper) for up to ~2x on this HBM-bound op.
    out = pl.pallas_call(
        kernel,
        out_shape=jax.ShapeDtypeStruct((1, 1), jnp.float32),
        grid_spec=pltpu.PrefetchScalarGridSpec(
            num_scalar_prefetch=0,
            grid=grid,
            in_specs=in_specs,
            out_specs=pl.BlockSpec((1, 1), lambda ni, j: (0, 0)),
            scratch_shapes=[pltpu.VMEM((1, tm), jnp.float32)],
        ),
        compiler_params=pltpu.CompilerParams(
            dimension_semantics=("arbitrary", "arbitrary"),
        ),
    )(*inputs)
    return out[0, 0]


def _focal_loss_ref(logit, target, *, gamma=2.0, smooth=1e-5, size_average=True):
    """Pure-JAX reference (alpha=None) mirroring the PyTorch module."""
    c = logit.shape[1]
    p = jax.nn.softmax(logit.astype(jnp.float32), axis=1)
    p = jnp.moveaxis(p, 1, -1).reshape(-1, c)
    t = target.reshape(-1).astype(jnp.int32)
    one_hot = jax.nn.one_hot(t, c, dtype=jnp.float32)
    one_hot = jnp.clip(one_hot, smooth / (c - 1), 1.0 - smooth)
    pt = jnp.sum(one_hot * p, axis=-1) + smooth
    logpt = jnp.log(pt)
    loss = -1.0 * jnp.power(1.0 - pt, gamma) * logpt   # alpha == 1 everywhere
    return jnp.mean(loss) if size_average else jnp.sum(loss)


if __name__ == "__main__":
    key = jax.random.PRNGKey(0)
    k1, k2, k3, k4 = jax.random.split(key, 4)

    # Case 1: NCHW logits, aligned spatial size.
    N, C, H, W = 2, 4, 16, 16
    logits = jax.random.normal(k1, (N, C, H, W), dtype=jnp.float32)
    target = jax.random.randint(k2, (N, 1, H, W), 0, C, dtype=jnp.int32)
    loss = jax.block_until_ready(
        focal_loss(logits, target, alpha=None, gamma=2.0,
                   smooth=1e-5, size_average=True))
    ref = jax.block_until_ready(_focal_loss_ref(logits, target))
    assert jnp.allclose(loss, ref, rtol=1e-5, atol=1e-6), (loss, ref)

    # Case 2: ragged spatial tail (tile does not divide H*W) exercises the mask.
    N2, C2, H2, W2 = 2, 6, 10, 13
    logits2 = jax.random.normal(k3, (N2, C2, H2, W2), dtype=jnp.float32)
    target2 = jax.random.randint(k4, (N2, H2, W2), 0, C2, dtype=jnp.int32)
    loss2 = jax.block_until_ready(focal_loss(logits2, target2, tile_m=128))
    ref2 = jax.block_until_ready(_focal_loss_ref(logits2, target2))
    assert jnp.allclose(loss2, ref2, rtol=1e-5, atol=1e-6), (loss2, ref2)

    print("KERNEL_OK")
</pallas_src>

<mosaic_0001>
module attributes {stable_mosaic.version = 11 : i64} {
  func.func @_focal_loss_kernel(%arg0: i32, %arg1: i32, %arg2: memref<1x4x256xf32, #tpu.memory_space<vmem>>, %arg3: memref<1x1x256xi32, #tpu.memory_space<vmem>>, %arg4: memref<1x1xf32, #tpu.memory_space<vmem>>, %arg5: memref<1x256xf32, #tpu.memory_space<vmem>>) attributes {dimension_semantics = [#tpu.dimension_semantics<arbitrary>, #tpu.dimension_semantics<arbitrary>], iteration_bounds = array<i64: 2, 1>, scalar_prefetch = 0 : i64, scratch_operands = 1 : i64, tpu.core_type = #tpu.core_type<tc>, window_params = [{transform_indices = @transform_0, window_bounds = array<i64: 1, 4, 256>}, {transform_indices = @transform_1, window_bounds = array<i64: 1, 1, 256>}, {pipeline_mode = #tpu.pipeline_mode<synchronous>, transform_indices = @transform_2, window_bounds = array<i64: 1, 1>}]} {
    %c0_i32 = arith.constant 0 : i32
    %0 = arith.cmpi eq, %arg0, %c0_i32 : i32
    %c0_i32_0 = arith.constant 0 : i32
    %1 = arith.cmpi eq, %arg1, %c0_i32_0 : i32
    %2 = arith.andi %0, %1 : i1
    %3 = arith.extui %2 : i1 to i32
    %c0_i32_1 = arith.constant 0 : i32
    %4 = arith.cmpi ne, %3, %c0_i32_1 : i32
    scf.if %4 {
      %cst_21 = arith.constant 0.000000e+00 : f32
      %46 = vector.broadcast %cst_21 : f32 to vector<1x256xf32>
      %c0_22 = arith.constant 0 : index
      %c0_23 = arith.constant 0 : index
      %47 = vector.load %arg5[%c0_22, %c0_23] : memref<1x256xf32, #tpu.memory_space<vmem>>, vector<1x256xf32>
      tpu.vector_store %arg5[%c0_22, %c0_23], %46 {strides = array<i32>} : memref<1x256xf32, #tpu.memory_space<vmem>>, vector<1x256xf32>,
    } else {
    }
    %c0 = arith.constant 0 : index
    %c0_2 = arith.constant 0 : index
    %c0_3 = arith.constant 0 : index
    %5 = vector.load %arg2[%c0, %c0_2, %c0_3] : memref<1x4x256xf32, #tpu.memory_space<vmem>>, vector<1x4x256xf32>
    %6 = vector.shape_cast %5 : vector<1x4x256xf32> to vector<4x256xf32>
    %c0_4 = arith.constant 0 : index
    %c0_5 = arith.constant 0 : index
    %c0_6 = arith.constant 0 : index
    %7 = vector.load %arg3[%c0_4, %c0_5, %c0_6] : memref<1x1x256xi32, #tpu.memory_space<vmem>>, vector<1x1x256xi32>
    %8 = vector.shape_cast %7 : vector<1x1x256xi32> to vector<1x256xi32>
    %cst = arith.constant dense<0xFF800000> : vector<256xf32>
    %9 = vector.multi_reduction <maximumf>, %6, %cst [0] : vector<4x256xf32> to vector<256xf32>
    %10 = vector.shape_cast %9 : vector<256xf32> to vector<1x256xf32>
    %11 = vector.broadcast %10 : vector<1x256xf32> to vector<4x256xf32>
    %12 = arith.subf %6, %11 : vector<4x256xf32>
    %13 = math.exp %12 : vector<4x256xf32>
    %cst_7 = arith.constant dense<0.000000e+00> : vector<256xf32>
    %14 = vector.multi_reduction <add>, %13, %cst_7 [0] : vector<4x256xf32> to vector<256xf32>
    %15 = vector.shape_cast %14 : vector<256xf32> to vector<1x256xf32>
    %16 = tpu.iota {dimensions = array<i32: 0>} : vector<4x1xi32>
    %17 = vector.broadcast %16 : vector<4x1xi32> to vector<4x256xi32>
    %18 = vector.broadcast %8 : vector<1x256xi32> to vector<4x256xi32>
    %19 = arith.cmpi eq, %17, %18 : vector<4x256xi32>
    %cst_8 = arith.constant 0.000000e+00 : f32
    %20 = vector.broadcast %cst_8 : f32 to vector<4x256xf32>
    %21 = arith.select %19, %13, %20 : vector<4x256xi1>, vector<4x256xf32>
    %cst_9 = arith.constant dense<0.000000e+00> : vector<256xf32>
    %22 = vector.multi_reduction <add>, %21, %cst_9 [0] : vector<4x256xf32> to vector<256xf32>
    %23 = vector.shape_cast %22 : vector<256xf32> to vector<1x256xf32>
    %24 = arith.divf %23, %15 : vector<1x256xf32>
    %cst_10 = arith.constant 0.999986648 : f32
    %25 = vector.broadcast %cst_10 : f32 to vector<1x256xf32>
    %26 = arith.mulf %25, %24 : vector<1x256xf32>
    %cst_11 = arith.constant 3.33333332E-6 : f32
    %27 = vector.broadcast %cst_11 : f32 to vector<1x256xf32>
    %28 = arith.addf %27, %26 : vector<1x256xf32>
    %cst_12 = arith.constant 9.99999974E-6 : f32
    %29 = vector.broadcast %cst_12 : f32 to vector<1x256xf32>
    %30 = arith.addf %28, %29 : vector<1x256xf32>
    %31 = math.log %30 : vector<1x256xf32>
    %cst_13 = arith.constant 1.000000e+00 : f32
    %32 = vector.broadcast %cst_13 : f32 to vector<1x256xf32>
    %33 = arith.subf %32, %30 : vector<1x256xf32>
    %34 = arith.mulf %33, %33 : vector<1x256xf32>
    %cst_14 = arith.constant -1.000000e+00 : f32
    %35 = vector.broadcast %cst_14 : f32 to vector<1x256xf32>
    %36 = arith.mulf %35, %34 : vector<1x256xf32>
    %37 = arith.mulf %36, %31 : vector<1x256xf32>
    %c0_15 = arith.constant 0 : index
    %c0_16 = arith.constant 0 : index
    %38 = vector.load %arg5[%c0_15, %c0_16] : memref<1x256xf32, #tpu.memory_space<vmem>>, vector<1x256xf32>
    %39 = arith.addf %38, %37 : vector<1x256xf32>
    %c0_17 = arith.constant 0 : index
    %c0_18 = arith.constant 0 : index
    %40 = vector.load %arg5[%c0_17, %c0_18] : memref<1x256xf32, #tpu.memory_space<vmem>>, vector<1x256xf32>
    tpu.vector_store %arg5[%c0_17, %c0_18], %39 {strides = array<i32>} : memref<1x256xf32, #tpu.memory_space<vmem>>, vector<1x256xf32>,
    %c1_i32 = arith.constant 1 : i32
    %41 = arith.cmpi eq, %arg0, %c1_i32 : i32
    %c0_i32_19 = arith.constant 0 : i32
    %42 = arith.cmpi eq, %arg1, %c0_i32_19 : i32
    %43 = arith.andi %41, %42 : i1
    %44 = arith.extui %43 : i1 to i32
    %c0_i32_20 = arith.constant 0 : i32
    %45 = arith.cmpi ne, %44, %c0_i32_20 : i32
    scf.if %45 {
      %c0_21 = arith.constant 0 : index
      %c0_22 = arith.constant 0 : index
      %46 = vector.load %arg5[%c0_21, %c0_22] : memref<1x256xf32, #tpu.memory_space<vmem>>, vector<1x256xf32>
      %47 = vector.shape_cast %46 : vector<1x256xf32> to vector<1x1x256xf32>
      %cst_23 = arith.constant dense<0.000000e+00> : vector<1xf32>
      %48 = vector.multi_reduction <add>, %47, %cst_23 [1, 2] : vector<1x1x256xf32> to vector<1xf32>
      %49 = vector.shape_cast %48 : vector<1xf32> to vector<1x1x1xf32>
      %50 = vector.extract %49[0, 0, 0] : f32 from vector<1x1x1xf32>
      %51 = vector.broadcast %50 : f32 to vector<1x1xf32>
      %cst_24 = arith.constant 5.120000e+02 : f32
      %52 = vector.broadcast %cst_24 : f32 to vector<1x1xf32>
      %53 = arith.divf %51, %52 : vector<1x1xf32>
      %c0_25 = arith.constant 0 : index
      %c0_26 = arith.constant 0 : index
      %54 = vector.load %arg4[%c0_25, %c0_26] : memref<1x1xf32, #tpu.memory_space<vmem>>, vector<1x1xf32>
      tpu.vector_store %arg4[%c0_25, %c0_26], %53 {strides = array<i32>} : memref<1x1xf32, #tpu.memory_space<vmem>>, vector<1x1xf32>,
    } else {
    }
    return
  }
  func.func @transform_0(%arg0: i32, %arg1: i32) -> (i32, i32, i32) {
    %c0_i32 = arith.constant 0 : i32
    %c0_i32_0 = arith.constant 0 : i32
    return %arg0, %c0_i32, %arg1 : i32, i32, i32
  }
  func.func @transform_1(%arg0: i32, %arg1: i32) -> (i32, i32, i32) {
    %c0_i32 = arith.constant 0 : i32
    %c0_i32_0 = arith.constant 0 : i32
    return %arg0, %c0_i32, %arg1 : i32, i32, i32
  }
  func.func @transform_2(%arg0: i32, %arg1: i32) -> (i32, i32) {
    %c0_i32 = arith.constant 0 : i32
    %c0_i32_0 = arith.constant 0 : i32
    %c0_i32_1 = arith.constant 0 : i32
    return %c0_i32, %c0_i32_0 : i32, i32
  }
}

</mosaic_0001>

<bundles_post_ra>
// kernel: tpu_custom_call.1
= control target key start
LH: loop header
LB: loop body
LE: loop exit
PB: predicated region body
PF: predicated region fallthrough
CT: control target
= control target key end

     0   :  { %7 = vsyncpa [#allocation4], 0  ;;  %s904_s0 = inlined_call_operand.hbm [shape: f32[2,4,256], index: 0, kind: input, shape index: {}]   ;;  %s905_s1 = inlined_call_operand.hbm [shape: s32[2,1,256], index: 1, kind: input, shape index: {}]   ;;  %s906_s2 = inlined_call_operand.hbm [shape: f32[1,1], index: 2, kind: output, shape index: {}]  }
   0x1   :  { %9 = vsyncpa [#allocation4 + $0x1], 0 }
   0x2   :  { %10 = vsyncpa [#allocation7], 0 }
   0x3   :  { %12 = vsyncpa [#allocation7 + $0x1], 0 }
   0x4   :  { %13 = vsyncpa [#allocation5], 0  ;;  %s732_s9 = smov 0   ;;  %s734_s10 = smov 0  }
   0x5   :  { %s736_s11 = smov 0   ;;  %s738_s12 = smov 0  }
   0x6   :  { %s740_s13 = smov 0   ;;  %s742_s14 = smov 0  }
   0x7 LB: > { %s468_s15 = sadd.s32 4294967295, %s710_s14   ;;  %s31_s16 = sadd.s32 1, %s706_s13  ;;  %s710_s14 = sphi %s742_s14, %s19_s14   ;;  %s706_s13 = sphi %s740_s13, %s916_s13   ;;  %s702_s12 = sphi %s738_s12, %s915_s12   ;;  %s698_s11 = sphi %s736_s11, %s914_s11   ;;  %s694_s10 = sphi %s734_s10, %s913_s10   ;;  %s690_s9 = sphi %s732_s9, %s912_s9  }
   0x8   : > { %p33_p0 = scmp.ge.s32.totalorder %s31_s16, 2  ;;  %s40_s17 = sadd.s32 1, %s698_s11 }
   0x9   : > { %p47_p1 = scmp.ne.s32.totalorder %s698_s11, %s694_s10  ;;  %p48_p2 = scmp.eq.s32.totalorder %s710_s14, 0 }
   0xa   : > { %s918_s16 = smov (%p33_p0, %s31_s16), 0  ;;  %p53_p4 = scmp.ne.s32.totalorder %s694_s10, %s690_s9 }
   0xb   : > { %p768_p3 = por %p48_p2, %p47_p1  ;;  %s35_s19 = ssub.s32 %s706_s13, %s918_s16 }
   0xc   : > { %p54_p5 = scmp.eq.s32.totalorder %s468_s15, 0  ;;  %p38_p6 = scmp.eq.s32.totalorder %s35_s19, 0 }
   0xd   : > { %p507_p8 = scmp.lt.s32.totalorder %s710_s14, 2  ;;  %s786_s22 = sand.u32 1, %s698_s11  }
   0xe   : > { %p777_p7 = por %p54_p5, %p53_p4  ;;  %s486_s23 = sshll.u32 %s706_s13, 7 }
   0xf   : > { %s783_s21 = scalar_select %p38_p6, %s698_s11, %s40_s17  }
  0x10   : > { %s471_s24 = sshll.u32 %s786_s22, 3  ;;  %s138_s27 = scalar_lea.hbm %s904_s0, %s486_s23 }
  0x11   : > { %s130_s28 = scalar_lea.vmem [#allocation3], %s471_s24  ;;  %p795_p9 = pnand %p507_p8, %p768_p3 }
  0x12   : > { %s140_s29 = sshll.u32 %s130_s28, 4  ;;  %p477_p10 = scmp.ge.s32.totalorder %s710_s14, 1  ;;  %s141_s29 = int_to_ptr.vmem [resolvable:$true] %s140_s29 }
  0x13   : > { %p166_p11 = scmp.lt.s32.totalorder %s710_s14, 3  ;;  %s127_s3 = scalar_lea.sflag [#allocation4], %s786_s22 }
  0x14   : > { %p574_p12 = pneg %p795_p9  ;;  %s585_s4 = scalar_lea.vmem %s141_s29, 128 }
  0x15   : > { %p586_p13 = scmp.ne.s32.totalorder %s141_s29, %s585_s4  ;;  %s712_s5 = smov [#allocation3]  }
  0x16   : > { %s590_s6 = sshll.u32 %s712_s5, 4  ;;  %s591_s6 = int_to_ptr.vmem [resolvable:$false] %s590_s6 }
  0x17   : > { %p588_p0 = pnand %p586_p13, %p574_p12  ;;  %s592_s7 = scalar_lea.vmem %s591_s6, 256 }
  0x18   : > { %p593_p2 = scmp.lt.s32.totalorder %s141_s29, %s591_s6  ;;  %p594_p3 = scmp.lt.s32.totalorder %s592_s7, %s585_s4 }
  0x19   : > { %p589_p1 = pneg %p588_p0 }
  0x1a   : > { %p595_p4 = por %p594_p3, %p593_p2 }
  0x1c   : > { %p596_p5 = pnand %p595_p4, %p589_p1 }
  0x1e   : > { %599 = shalt.err (!%p596_p5)
}
  0x1f   : > { %503 = dma.hbm_to_vmem [thread:$0]  (!%p795_p9), %s138_s27, 128, %s141_s29, %s127_s3  }
  0x20   : > { %p813_p6 = pnand %p477_p10, %p166_p11  ;;  %s474_s9 = sshll.u32 %s786_s22, 1 }
  0x21   : > { %s487_s17 = sshll.u32 %s706_s13, 5  ;;  %s151_s24 = scalar_lea.vmem [#allocation6], %s474_s9 }
  0x22   : > { %s159_s23 = scalar_lea.hbm %s905_s1, %s487_s17  ;;  %s161_s25 = sshll.u32 %s151_s24, 4  ;;  %s162_s25 = int_to_ptr.vmem [resolvable:$true] %s161_s25 }
  0x23   : > { %s148_s26 = scalar_lea.sflag [#allocation7], %s786_s22  ;;  %s613_s28 = scalar_lea.vmem %s162_s25, 32 }
  0x24   : > { %p614_p8 = scmp.ne.s32.totalorder %s162_s25, %s613_s28  ;;  %s713_s27 = smov [#allocation6]  }
  0x25   : > { %s618_s29 = sshll.u32 %s713_s27, 4  ;;  %s619_s29 = int_to_ptr.vmem [resolvable:$false] %s618_s29 }
  0x26   : > { %p616_p13 = pnand %p614_p8, %p574_p12  ;;  %s620_s3 = scalar_lea.vmem %s619_s29, 64 }
  0x27   : > { %p621_p10 = scmp.lt.s32.totalorder %s162_s25, %s619_s29  ;;  %p622_p11 = scmp.lt.s32.totalorder %s620_s3, %s613_s28 }
  0x28   : > { %p617_p0 = pneg %p616_p13 }
  0x29   : > { %p623_p1 = por %p622_p11, %p621_p10 }
  0x2b   : > { %p624_p2 = pnand %p623_p1, %p617_p0 }
  0x2d   : > { %627 = shalt.err (!%p624_p2)
}
  0x2e   : > { %506 = dma.hbm_to_vmem [thread:$0]  (!%p795_p9), %s159_s23, 32, %s162_s25, %s148_s26  }
  0x2f   : > { %170 = sbr.rel (%p813_p6) target bundleno = 394 (0x18a), region = 28  ;;  %s172_s22 = sand.u32 (!%p813_p6), 1, %s694_s10  }
  0x30   : > { %s478_s4 = sshll.u32 (!%p813_p6), %s172_s22, 3  ;;  %s173_s5 = scalar_lea.sflag (!%p813_p6), [#allocation4], %s172_s22 }
  0x31   : > { %s176_s6 = scalar_lea.vmem (!%p813_p6), [#allocation3], %s478_s4 }
  0x34   : > { %677 = dma.done.wait (%p777_p7), %s173_s5, 128  }
  0x35   : > { %679 = vsyncadd (%p777_p7), %s173_s5, 4294967168  ;;  %s479_s7 = sshll.u32 %s172_s22, 1  ;;  %s182_s9 = scalar_lea.sflag [#allocation7], %s172_s22 }
  0x36   : > { %s835_s17 = scalar_lea.vmem [#allocation6], %s479_s7 }
  0x37   : > { %681 = dma.done.wait (%p777_p7), %s182_s9, 32  }
  0x38   : > { %683 = vsyncadd (%p777_p7), %s182_s9, 4294967264  ;;  %p208_p9 = scmp.eq.s32.totalorder %s702_s12, 0 }
  0x39   : > { %v214_v0 = vlaneseq (%p208_p9)  ;;  %v714_v1 = vmov (%p208_p9), 0.0  }
  0x3a   : > { %213 = sbr.rel (!%p208_p9) target bundleno = 63 (0x3f), region = 40 }
  0x3b   : > { %vm216_vm0 = vcmp.lt.s32.totalorder (%p208_p9), %v214_v0, 256 }
  0x3c   : > { %218 = vst.msk [vmem:[#allocation2] sm:$0x3] (%p208_p9), %vm216_vm0, %v714_v1 }
  0x3f PF: > { %v219_v2 = vld [vmem:[%s176_s6] sm:$0xff]  ;;  %vm224_vm1 = vcmask 1043456   ;;  %p338_p12 = scmp.eq.s32.totalorder %s702_s12, 1  ;;  %v263_v19 = vlaneseq  ;;  %v220_v24 = vld [vmem:[%s835_s17] sm:$0x3] }
  0x40   : > { %v222_v3 = vcombine.high %v219_v2, %v219_v2  ;;  %v225_v4 = vsel %vm224_vm1, %v219_v2, -inf  ;;  %vm355_vm5 = vcmask (%p338_p12), 1040384   ;;  %vm371_vm6 = vcmask (%p338_p12), 0  }
  0x41   : > { %v226_v5 = vrot.slane %v225_v4, 4  ;;  %v846_v22 = vshrl.u32 %v263_v19, 7  ;;  %vm335_vm4 = vcmp.lt.s32.totalorder %v263_v19, 256 }
  0x42   : > { %v232_v6 = vsel %vm224_vm1, %v222_v3, -inf }
  0x43   : > { %v227_v7 = vmax.f32 %v225_v4, %v226_v5  ;;  %v233_v8 = vrot.slane %v232_v6, 4  ;;  %v267_v23 = vsub.s32 0, %v846_v22  ;;  %v271_v25 = vsub.s32 1, %v846_v22 }
  0x45   : > { %v228_v9 = vrot.slane %v227_v7, 2  ;;  %v234_v10 = vmax.f32 %v232_v6, %v233_v8  ;;  %v268_v26 = vrot.slane %v220_v24, %v267_v23  ;;  %v272_v27 = vrot.slane %v220_v24, %v271_v25 }
  0x47   : > { %v229_v11 = vmax.f32 %v227_v7, %v228_v9  ;;  %v235_v12 = vrot.slane %v234_v10, 2  ;;  %vm273_vm2 = vcmp.eq.s32.totalorder %v846_v22, %v268_v26  ;;  %vm274_vm3 = vcmp.eq.s32.totalorder %v846_v22, %v272_v27 }
  0x49   : > { %v230_v13 = vrot.slane %v229_v11, 1  ;;  %v236_v14 = vmax.f32 %v234_v10, %v235_v12  ;;  %v715_v10 = vmov 1966171168  }
  0x4b   : > { %v231_v15 = vmax.f32 %v229_v11, %v230_v13  ;;  %v237_v16 = vrot.slane %v236_v14, 1  ;;  %v318_v11 = vunpack.c.l.s4 %v715_v10 }
  0x4d   : > { %v238_v17 = vmax.f32 %v236_v14, %v237_v16  ;;  %v319_v16 = vunpack.c.0.s8 %v318_v11 }
  0x4f   : > { %v241_v18 = vcombine.low %v231_v15, %v238_v17  ;;  %v322_v24 = vsub.s32 %v319_v16, %v846_v22 }
  0x51   : > { %v243_v20 = vsub.f32 %v219_v2, %v241_v18 }
  0x53   : > { %v244_v21 = vmul.f32 1.442695, %v243_v20 }
  0x55   : > { %562 = vpow2.f32 %v244_v21 }
  0x62   : > { %v563_v28 = vpop.eup %562 }
  0x63   : > { %v247_v29 = vcombine.high %v563_v28, %v563_v28  ;;  %v249_v30 = vsel %vm224_vm1, %v563_v28, 0.0  ;;  %v275_v31 = vsel %vm273_vm2, %v563_v28, 0.0  ;;  %v313_v28 = vld [vmem:[#allocation2] sm:$0x3] }
  0x64   : > { %v250_v32 = vrot.slane %v249_v30, 4  ;;  %v277_v33 = vsel %vm224_vm1, %v275_v31, 0.0 }
  0x65   : > { %v256_v34 = vsel %vm224_vm1, %v247_v29, 0.0  ;;  %v276_v35 = vsel %vm274_vm3, %v247_v29, 0.0  ;;  %v278_v38 = vrot.slane %v277_v33, 4 }
  0x66   : > { %v251_v36 = vadd.f32 %v250_v32, %v249_v30  ;;  %v257_v37 = vrot.slane %v256_v34, 4  ;;  %v284_v39 = vsel %vm224_vm1, %v276_v35, 0.0 }
  0x67   : > { %v285_v42 = vrot.slane %v284_v39, 4  ;;  %v279_v45 = vadd.f32 %v278_v38, %v277_v33 }
  0x68   : > { %v252_v40 = vrot.slane %v251_v36, 2  ;;  %v258_v41 = vadd.f32 %v257_v37, %v256_v34 }
  0x69   : > { %v286_v48 = vadd.f32 %v285_v42, %v284_v39  ;;  %v280_v51 = vrot.slane %v279_v45, 2 }
  0x6a   : > { %v253_v43 = vadd.f32 %v252_v40, %v251_v36  ;;  %v259_v44 = vrot.slane %v258_v41, 2 }
  0x6b   : > { %v287_v53 = vrot.slane %v286_v48, 2  ;;  %v281_v54 = vadd.f32 %v280_v51, %v279_v45 }
  0x6c   : > { %v254_v46 = vrot.slane %v253_v43, 1  ;;  %v260_v47 = vadd.f32 %v259_v44, %v258_v41 }
  0x6d   : > { %v288_v55 = vadd.f32 %v287_v53, %v286_v48  ;;  %v282_v56 = vrot.slane %v281_v54, 1 }
  0x6e   : > { %v255_v49 = vadd.f32 %v254_v46, %v253_v43  ;;  %v261_v50 = vrot.slane %v260_v47, 1 }
  0x6f   : > { %v289_v57 = vrot.slane %v288_v55, 1  ;;  %v283_v58 = vadd.f32 %v282_v56, %v281_v54 }
  0x70   : > { %v262_v52 = vadd.f32 %v261_v50, %v260_v47  ;;  %564 = vrcp.f32 %v255_v49 }
  0x71   : > { %v290_v59 = vadd.f32 %v289_v57, %v288_v55 }
  0x72   : > { %566 = vrcp.f32 %v262_v52 }
  0x7d   : > { %v565_v60 = vpop.eup %564 }
  0x7e   : > { %v292_v61 = vmul.f32 %v565_v60, %v283_v58 }
  0x7f   : > { %v567_v62 = vpop.eup %566 }
  0x80   : > { %v294_v63 = vmul.f32 %v567_v62, %v290_v59  ;;  %v295_v0 = vmul.f32 0.99998665, %v292_v61 }
  0x82   : > { %v296_v1 = vmul.f32 0.99998665, %v294_v63  ;;  %v297_v2 = vadd.f32 3.3333333e-06, %v295_v0 }
  0x84   : > { %v298_v3 = vadd.f32 3.3333333e-06, %v296_v1  ;;  %v299_v4 = vadd.f32 1e-05, %v297_v2 }
  0x86   : > { %v300_v5 = vadd.f32 1e-05, %v298_v3  ;;  %568 = vlog2.f32 %v299_v4  ;;  %v305_v6 = vsub.f32 1.0, %v299_v4 }
  0x88   : > { %570 = vlog2.f32 %v300_v5  ;;  %v306_v7 = vsub.f32 1.0, %v300_v5  ;;  %v307_v8 = vmul.f32 %v305_v6, %v305_v6 }
  0x8a   : > { %v308_v9 = vmul.f32 %v306_v7, %v306_v7  ;;  %v309_v12 = vmul.f32 -1.0, %v307_v8 }
  0x8c   : > { %v310_v15 = vmul.f32 -1.0, %v308_v9 }
  0x93   : > { %v569_v13 = vpop.eup %568 }
  0x94   : > { %v302_v14 = vmul.f32 0.6931472, %v569_v13 }
  0x95   : > { %v571_v17 = vpop.eup %570 }
  0x96   : > { %v304_v18 = vmul.f32 0.6931472, %v571_v17  ;;  %v311_v20 = vmul.f32 %v309_v12, %v302_v14 }
  0x98   : > { %v312_v21 = vmul.f32 %v310_v15, %v304_v18 }
  0x9a   : > { %v316_v26 = vcombine.low %v311_v20, %v312_v21 }
  0x9c   : > { %v323_v27 = vrot.slane %v316_v26, %v322_v24 }
  0x9e   : > { %v330_v29 = vrot.slane %v323_v27, %v322_v24  ;;  %342 = sbr.rel (!%p338_p12) target bundleno = 379 (0x17b), region = 44 }
  0xa0   : > { %v332_v30 = vadd.f32 %v330_v29, %v313_v28 }
  0xa2   : > { %337 = vst.msk [vmem:[#allocation2] sm:$0x3] %vm335_vm4, %v332_v30 }
  0xa9   : > { %v343_v31 = vld [vmem:[#allocation2] sm:$0x3] }
  0xaa   : > { %v348_v32 = vrot.slane %v343_v31, %v267_v23  ;;  %v352_v33 = vrot.slane %v343_v31, %v271_v25 }
  0xac   : > { %v356_v34 = vsel %vm355_vm5, %v348_v32, 0.0  ;;  %v357_v35 = vsel %vm355_vm5, %v352_v33, 0.0 }
  0xad   : > { %v358_v36 = vadd.f32 %v357_v35, %v356_v34 }
  0xaf   : > { %359 = vadd.xlane.f32.xlu0 %v358_v36 }
 0x138   : > { %v360_v37 = vpop.xlane.xlu0 %359 }
 0x139   : > { %v361_v38 = vrot.slane %v360_v37, 4 }
 0x13b   : > { %v362_v19 = vadd.f32 %v361_v38, %v360_v37 }
 0x13d   : > { %v363_v39 = vrot.slane %v362_v19, 2 }
 0x13f   : > { %v364_v40 = vadd.f32 %v363_v39, %v362_v19 }
 0x141   : > { %v365_v41 = vrot.slane %v364_v40, 1 }
 0x143   : > { %v366_v42 = vadd.f32 %v365_v41, %v364_v40 }
 0x145   : > { %490 = vpush %v366_v42 }
 0x176   : > { %s491_s12 = spop %490 }
 0x177   : > { %v368_v43 = vstv %s491_s12 }
 0x178   : > { %v370_v44 = vmul.f32 0.001953125, %v368_v43 }
 0x17a   : > { %372 = vst.msk [vmem:[#allocation8] sm:$0x1] %vm371_vm6, %v370_v44 }
 0x17b PF: > { %p871_p7 = scmp.eq.s32.totalorder %s468_s15, 1  ;;  %s716_s30 = smov [#allocation8]  }
 0x17c   : > { %s380_s8 = sshll.u32 %s716_s30, 4  ;;  %s381_s8 = int_to_ptr.vmem [resolvable:$true] %s380_s8 }
 0x17d   : > { %s628_s18 = scalar_lea.vmem %s381_s8, 16  ;;  %s634_s19 = scalar_lea.vmem %s381_s8, 32 }
 0x17e   : > { %p629_p3 = scmp.ne.s32.totalorder %s381_s8, %s628_s18  ;;  %p635_p6 = scmp.lt.s32.totalorder %s381_s8, %s381_s8 }
 0x17f   : > { %p636_p8 = scmp.lt.s32.totalorder %s634_s19, %s628_s18 }
 0x180   : > { %p630_p4 = pnand %p629_p3, %p871_p7 }
 0x181   : > { %p637_p13 = por %p636_p8, %p635_p6 }
 0x182   : > { %p631_p5 = pneg %p630_p4 }
 0x184   : > { %p638_p0 = pnand %p637_p13, %p631_p5 }
 0x186   : > { %641 = shalt.err (!%p638_p0)
}
 0x187   : > { %497 = dma.vmem_to_hbm [thread:$0]  (%p871_p7), %s381_s8, 16, %s906_s2, [#allocation5]  }
 0x188   : > { %685 = dma.done.wait (%p871_p7), [#allocation5], 16  }
 0x189   : > { %687 = vsyncadd (%p871_p7), [#allocation5], 4294967280 }
 0x18a PF: > { %s19_s14 = sadd.s32 1, %s710_s14   ;;  %s912_s9 = smov %s694_s10 }
 0x18b   : > { %p16_p10 = scmp.ge.s32.totalorder %s19_s14, 4   ;;  %s913_s10 = smov %s698_s11 }
 0x18c   : > { %s914_s11 = smov %s783_s21  ;;  %s915_s12 = smov %s706_s13 }
 0x18d   : > { %s916_s13 = smov %s918_s16  ;;  %18 = sbr.rel (!%p16_p10) target bundleno = 7 (0x7), region = 86 }
 0x192   :  { %393 = vsyncpa [#allocation4], 1 }
 0x193   :  { %395 = vsyncpa [#allocation4 + $0x1], 1 }
 0x194   :  { %396 = vsyncpa [#allocation7], 1 }
 0x195   :  { %398 = vsyncpa [#allocation7 + $0x1], 1 }
 0x196   :  { %399 = vsyncpa [#allocation5], 1 }
 0x197   :  { %401 = vsyncpa [#allocation5 + $0x1], 1 }

</bundles_post_ra>
